<compile_context>
chip_gen: v6e
topology: v6e:2x2x1
jax: 0.10.0
libtpu: 0.0.40
codegen_flags: <defaults>
</compile_context>

<pallas_src>
import functools

import jax
import jax.numpy as jnp
from jax.experimental import pallas as pl
from jax.experimental.pallas import tpu as pltpu


def _attention_kernel(x_ref, a_ref, len_ref, w_ref, aw_ref, *, pad_token_id):
    """One grid step == one block of BB batch elements.

    x_ref   : VMEM (BB, T, H)  inputs block (native dtype)
    a_ref   : VMEM (1, H)      attention parameter
    len_ref : VMEM (BB, 1)     int32 lengths for this block
    w_ref   : VMEM (BB, H)     weighted output
    aw_ref  : VMEM (BB, T)     attention-weights output
    """
    x = x_ref[...].astype(jnp.float32)        # (BB, T, H) accumulate in f32
    a = a_ref[...].astype(jnp.float32)        # (1, H)
    lens = len_ref[...]                       # (BB, 1) int32
    BB, T, H = x.shape

    # scores = inputs @ attention, done as VPU multiply + lane (H) reduce.
    # Result is (BB, T) with T lane-dense.
    scores = jnp.sum(x * a[None, :, :], axis=-1)                  # (BB, T)

    # Length mask (mirrors the PyTorch masked_fill semantics exactly).
    idx = jax.lax.broadcasted_iota(jnp.int32, (BB, T), 1)          # (BB, T)
    mask = (idx < lens).astype(jnp.float32)                        # (BB, T)
    neg_big = jnp.float32(-10000000000.0)
    masked = jnp.where(mask == jnp.float32(pad_token_id), neg_big, scores)

    # Softmax over the timestep axis (lane axis).
    m = jnp.max(masked, axis=-1, keepdims=True)                    # (BB, 1)
    e = jnp.exp(masked - m)                                        # (BB, T)
    s = jnp.sum(e, axis=-1, keepdims=True)                         # (BB, 1)
    attn_w = e / s                                                 # (BB, T)

    # weighted = attn_w @ inputs, done as VPU multiply + sublane (T) reduce.
    weighted = jnp.sum(attn_w[:, :, None] * x, axis=1)             # (BB, H)

    w_ref[...] = weighted.astype(w_ref.dtype)                      # (BB, H)
    aw_ref[...] = attn_w.astype(aw_ref.dtype)                      # (BB, T)


def attention_forward(inputs, input_lengths, attention_param, pad_token_id=0,
                      block_b=8):
    """Pallas implementation of Attention.forward.

    inputs          : (B, T, H) float (any float dtype; kept native in HBM)
    input_lengths   : (B,)      int
    attention_param : (H,)      float
    returns (weighted (B, H), attention_weights (B, T))
    """
    B, T, H = inputs.shape
    orig_B = B
    in_dtype = inputs.dtype

    lengths = input_lengths.astype(jnp.int32).reshape(B, 1)
    a2 = attention_param.reshape(1, H)

    if B <= block_b:
        BB = B                      # single block covering the whole batch
    else:
        BB = block_b                # keep block_b a multiple of 8
        pad = (-B) % BB
        if pad:
            inputs = jnp.pad(inputs, ((0, pad), (0, 0), (0, 0)))
            lengths = jnp.pad(lengths, ((0, pad), (0, 0)))
            B = B + pad

    grid = (B // BB,)
    kernel = functools.partial(_attention_kernel, pad_token_id=pad_token_id)

    # Per-step VMEM (double-buffered input block) is ~2*BB*T*H*dtype_bytes;
    # with block_b=8 and typical T, H this stays well under the 32 MiB scoped
    # default on all generations (incl. v7x's 64 MiB physical VMEM).
    weighted, attn_w = pl.pallas_call(
        kernel,
        out_shape=(
            jax.ShapeDtypeStruct((B, H), in_dtype),
            jax.ShapeDtypeStruct((B, T), jnp.float32),
        ),
        grid=grid,
        in_specs=[
            pl.BlockSpec((BB, T, H), lambda i: (i, 0, 0)),   # inputs block
            pl.BlockSpec((1, H), lambda i: (0, 0)),          # attention param
            pl.BlockSpec((BB, 1), lambda i: (i, 0)),         # lengths block
        ],
        out_specs=(
            pl.BlockSpec((BB, H), lambda i: (i, 0)),         # weighted
            pl.BlockSpec((BB, T), lambda i: (i, 0)),         # attention weights
        ),
        compiler_params=pltpu.CompilerParams(
            dimension_semantics=("parallel",),               # megacore sharding
        ),
    )(inputs, a2, lengths)

    return weighted[:orig_B], attn_w[:orig_B]


def _reference(inputs, input_lengths, attention_param, pad_token_id=0):
    """Pure-JAX reference mirroring the PyTorch forward."""
    B, T, H = inputs.shape
    attn = jnp.einsum("bth,h->bt", inputs.astype(jnp.float32),
                      attention_param.astype(jnp.float32))
    idxes = jnp.arange(T)[None, :]
    mask = (idxes < input_lengths[:, None]).astype(jnp.float32)
    attn_masked = jnp.where(mask == float(pad_token_id), -10000000000.0, attn)
    aw = jax.nn.softmax(attn_masked, axis=1)
    weighted = jnp.einsum("bt,bth->bh", aw, inputs.astype(jnp.float32))
    return weighted, aw


if __name__ == "__main__":
    key = jax.random.PRNGKey(0)
    k_inp, k_attn = jax.random.split(key)

    B, T, H = 2, 8, 32
    pad_token_id = 0

    inputs = jax.random.normal(k_inp, (B, T, H), dtype=jnp.float32)
    # nn.Parameter(torch.rand(attention_size)) -> uniform [0, 1)
    attention_param = jax.random.uniform(k_attn, (H,), dtype=jnp.float32)
    input_lengths = jnp.array([5, 8], dtype=jnp.int32)

    weighted, attn_weights = attention_forward(
        inputs, input_lengths, attention_param, pad_token_id
    )
    jax.block_until_ready((weighted, attn_weights))

    ref_w, ref_aw = _reference(inputs, input_lengths, attention_param, pad_token_id)

    assert weighted.shape == (B, H)
    assert attn_weights.shape == (B, T)
    assert jnp.allclose(weighted, ref_w, atol=1e-5, rtol=1e-5)
    assert jnp.allclose(attn_weights, ref_aw, atol=1e-5, rtol=1e-5)

    print("KERNEL_OK")
</pallas_src>

<mosaic_0001>
module attributes {stable_mosaic.version = 11 : i64} {
  func.func @_attention_kernel(%arg0: i32, %arg1: memref<2x8x32xf32, #tpu.memory_space<vmem>>, %arg2: memref<1x32xf32, #tpu.memory_space<vmem>>, %arg3: memref<2x1xi32, #tpu.memory_space<vmem>>, %arg4: memref<2x32xf32, #tpu.memory_space<vmem>>, %arg5: memref<2x8xf32, #tpu.memory_space<vmem>>) attributes {dimension_semantics = [#tpu.dimension_semantics<parallel>], iteration_bounds = array<i64: 1>, scalar_prefetch = 0 : i64, scratch_operands = 0 : i64, tpu.core_type = #tpu.core_type<tc>, window_params = [{transform_indices = @transform_0, window_bounds = array<i64: 2, 8, 32>}, {pipeline_mode = #tpu.pipeline_mode<synchronous>, transform_indices = @transform_1, window_bounds = array<i64: 1, 32>}, {transform_indices = @transform_2, window_bounds = array<i64: 2, 1>}, {transform_indices = @transform_3, window_bounds = array<i64: 2, 32>}, {transform_indices = @transform_4, window_bounds = array<i64: 2, 8>}]} {
    %c0 = arith.constant 0 : index
    %c0_0 = arith.constant 0 : index
    %c0_1 = arith.constant 0 : index
    %0 = vector.load %arg1[%c0, %c0_0, %c0_1] : memref<2x8x32xf32, #tpu.memory_space<vmem>>, vector<2x8x32xf32>
    %c0_2 = arith.constant 0 : index
    %c0_3 = arith.constant 0 : index
    %1 = vector.load %arg2[%c0_2, %c0_3] : memref<1x32xf32, #tpu.memory_space<vmem>>, vector<1x32xf32>
    %c0_4 = arith.constant 0 : index
    %c0_5 = arith.constant 0 : index
    %2 = vector.load %arg3[%c0_4, %c0_5] : memref<2x1xi32, #tpu.memory_space<vmem>>, vector<2x1xi32>
    %3 = vector.shape_cast %1 : vector<1x32xf32> to vector<1x1x32xf32>
    %4 = vector.broadcast %3 : vector<1x1x32xf32> to vector<2x8x32xf32>
    %5 = arith.mulf %0, %4 : vector<2x8x32xf32>
    %cst = arith.constant dense<0.000000e+00> : vector<2x8xf32>
    %6 = vector.multi_reduction <add>, %5, %cst [2] : vector<2x8x32xf32> to vector<2x8xf32>
    %7 = tpu.iota {dimensions = array<i32: 1>} : vector<2x8xi32>
    %8 = vector.broadcast %2 : vector<2x1xi32> to vector<2x8xi32>
    %9 = arith.cmpi slt, %7, %8 : vector<2x8xi32>
    %10 = arith.extui %9 : vector<2x8xi1> to vector<2x8xi32>
    %11 = arith.sitofp %10 : vector<2x8xi32> to vector<2x8xf32>
    %cst_6 = arith.constant 0.000000e+00 : f32
    %12 = vector.broadcast %cst_6 : f32 to vector<2x8xf32>
    %13 = arith.cmpf oeq, %11, %12 : vector<2x8xf32>
    %cst_7 = arith.constant -1.000000e+10 : f32
    %14 = vector.broadcast %cst_7 : f32 to vector<2x8xf32>
    %15 = arith.select %13, %14, %6 : vector<2x8xi1>, vector<2x8xf32>
    %cst_8 = arith.constant dense<0xFF800000> : vector<2xf32>
    %16 = vector.multi_reduction <maximumf>, %15, %cst_8 [1] : vector<2x8xf32> to vector<2xf32>
    %17 = vector.shape_cast %16 : vector<2xf32> to vector<2x1xf32>
    %18 = vector.broadcast %17 : vector<2x1xf32> to vector<2x8xf32>
    %19 = arith.subf %15, %18 : vector<2x8xf32>
    %20 = math.exp %19 : vector<2x8xf32>
    %cst_9 = arith.constant dense<0.000000e+00> : vector<2xf32>
    %21 = vector.multi_reduction <add>, %20, %cst_9 [1] : vector<2x8xf32> to vector<2xf32>
    %22 = vector.shape_cast %21 : vector<2xf32> to vector<2x1xf32>
    %23 = vector.broadcast %22 : vector<2x1xf32> to vector<2x8xf32>
    %24 = arith.divf %20, %23 : vector<2x8xf32>
    %25 = vector.shape_cast %24 : vector<2x8xf32> to vector<2x8x1xf32>
    %26 = vector.broadcast %25 : vector<2x8x1xf32> to vector<2x8x32xf32>
    %27 = arith.mulf %26, %0 : vector<2x8x32xf32>
    %cst_10 = arith.constant dense<0.000000e+00> : vector<2x32xf32>
    %28 = vector.multi_reduction <add>, %27, %cst_10 [1] : vector<2x8x32xf32> to vector<2x32xf32>
    %c0_11 = arith.constant 0 : index
    %c0_12 = arith.constant 0 : index
    %29 = vector.load %arg4[%c0_11, %c0_12] : memref<2x32xf32, #tpu.memory_space<vmem>>, vector<2x32xf32>
    tpu.vector_store %arg4[%c0_11, %c0_12], %28 {strides = array<i32>} : memref<2x32xf32, #tpu.memory_space<vmem>>, vector<2x32xf32>,
    %c0_13 = arith.constant 0 : index
    %c0_14 = arith.constant 0 : index
    %30 = vector.load %arg5[%c0_13, %c0_14] : memref<2x8xf32, #tpu.memory_space<vmem>>, vector<2x8xf32>
    tpu.vector_store %arg5[%c0_13, %c0_14], %24 {strides = array<i32>} : memref<2x8xf32, #tpu.memory_space<vmem>>, vector<2x8xf32>,
    return
  }
  func.func @transform_0(%arg0: i32) -> (i32, i32, i32) {
    %c0_i32 = arith.constant 0 : i32
    %c0_i32_0 = arith.constant 0 : i32
    %c0_i32_1 = arith.constant 0 : i32
    return %arg0, %c0_i32, %c0_i32_0 : i32, i32, i32
  }
  func.func @transform_1(%arg0: i32) -> (i32, i32) {
    %c0_i32 = arith.constant 0 : i32
    %c0_i32_0 = arith.constant 0 : i32
    %c0_i32_1 = arith.constant 0 : i32
    return %c0_i32, %c0_i32_0 : i32, i32
  }
  func.func @transform_2(%arg0: i32) -> (i32, i32) {
    %c0_i32 = arith.constant 0 : i32
    %c0_i32_0 = arith.constant 0 : i32
    return %arg0, %c0_i32 : i32, i32
  }
  func.func @transform_3(%arg0: i32) -> (i32, i32) {
    %c0_i32 = arith.constant 0 : i32
    %c0_i32_0 = arith.constant 0 : i32
    return %arg0, %c0_i32 : i32, i32
  }
  func.func @transform_4(%arg0: i32) -> (i32, i32) {
    %c0_i32 = arith.constant 0 : i32
    %c0_i32_0 = arith.constant 0 : i32
    return %arg0, %c0_i32 : i32, i32
  }
}

</mosaic_0001>

<bundles_post_ra>
// kernel: tpu_custom_call.1
= control target key start
LH: loop header
LB: loop body
LE: loop exit
PB: predicated region body
PF: predicated region fallthrough
CT: control target
= control target key end

     0   :  { %10 = vsyncpa [#allocation3], 0  ;;  %s289_s0 = inlined_call_operand.hbm [shape: f32[2,8,32], index: 0, kind: input, shape index: {}]   ;;  %s290_s1 = inlined_call_operand.vmem [shape: f32[1,32], index: 1, kind: input, shape index: {}]   ;;  %s291_s2 = inlined_call_operand.vmem [shape: s32[2,1], index: 2, kind: input, shape index: {}]   ;;  %s292_s3 = inlined_call_operand.hbm [shape: f32[2,32], index: 3, kind: output, shape index: {0}]   ;;  %s293_s4 = inlined_call_operand.hbm [shape: f32[2,8], index: 4, kind: output, shape index: {1}]  }
   0x1   :  { %11 = vsyncpa [#allocation4], 0 }
   0x2   :  { %12 = vsyncpa [#allocation7], 0  ;;  %s233_s15 = smov [#allocation2]  }
   0x3   :  { %s18_s16 = sshll.u32 %s233_s15, 4  ;;  %s19_s16 = int_to_ptr.vmem [resolvable:$true] %s18_s16 }
   0x4   :  { %s175_s17 = scalar_lea.vmem %s19_s16, 256  ;;  %p180_p1 = scmp.lt.s32.totalorder %s19_s16, %s19_s16 }
   0x5   :  { %p176_p0 = scmp.ne.s32.totalorder %s19_s16, %s175_s17  ;;  %p181_p2 = scmp.lt.s32.totalorder %s175_s17, %s175_s17 }
   0x7   :  { %p182_p3 = por %p181_p2, %p180_p1 }
   0x9   :  { %p183_p4 = pnand %p182_p3, %p176_p0 }
   0xb   :  { %186 = shalt.err (!%p183_p4)
}
   0xc   :  { %s234_s18 = smov 128   ;;  %s235_s19 = smov 8  }
   0xd   :  { %24 = dma.hbm_to_vmem [thread:$0]  %s289_s0, 256, %s19_s16, [#allocation3], %s234_s18, %s234_s18, %s235_s19  }
   0xe   :  { %227 = dma.done.wait [#allocation3], 256  }
   0xf   :  { %228 = vsyncadd [#allocation3], 4294967040  ;;  %v236_v0 = vmov 0   ;;  %v32_v1 = vld [vmem:[#allocation2] sm:$0xff]  ;;  %vm44_vm0 = vcmask 261120   ;;  %v33_v3 = vld [vmem:[#allocation2 + $0x8] sm:$0xff]  ;;  %v51_v9 = vlaneseq }
  0x10   :  { %161 = vset.pattern.permute.xlu1 %v236_v0  ;;  %162 = vset.pattern.permute.xlu0 %v236_v0  ;;  %v152_v2 = vld [vmem:[%s290_s1] ss:$0 sm:$0xff]  ;;  %v237_v15 = vmov 0.0   ;;  %vm70_vm2 = vcmask 1041409   ;;  %vm74_vm4 = vcmask 58368   ;;  %s238_s0 = smov [#allocation6]  }
  0x11   :  { %v42_v4 = vmul.f32 %v152_v2, %v32_v1  ;;  %v43_v5 = vmul.f32 %v152_v2, %v33_v3  ;;  %v35_v6 = vld [vmem:[%s291_s2] sm:$0x3]  ;;  %v52_v11 = vand.u32 127, %v51_v9  ;;  %v63_v12 = vshrl.u32 %v51_v9, 7  ;;  %s139_s1 = sshll.u32 %s238_s0, 4  ;;  %s140_s1 = int_to_ptr.vmem [resolvable:$true] %s139_s1 }
  0x12   :  { %54 = vperm.xlu1 %161, %v35_v6   ;;  %s187_s2 = scalar_lea.vmem %s140_s1, 32  ;;  %p192_p6 = scmp.lt.s32.totalorder %s140_s1, %s140_s1 }
  0x13   :  { %v45_v7 = vsel %vm44_vm0, %v42_v4, 0.0  ;;  %v48_v8 = vsel %vm44_vm0, %v43_v5, 0.0  ;;  %v64_v14 = vsub.s32 %v52_v11, %v63_v12  ;;  %v88_v29 = vsub.s32 0, %v63_v12  ;;  %p188_p5 = scmp.ne.s32.totalorder %s140_s1, %s187_s2  ;;  %p193_p7 = scmp.lt.s32.totalorder %s187_s2, %s187_s2 }
  0x14   :  { %46 = vadd.xlane.f32.xlu0 %v45_v7  ;;  %v95_v33 = vsub.s32 1, %v63_v12 }
  0x15   :  { %p194_p8 = por %p193_p7, %p192_p6 }
  0x17   :  { %p195_p9 = pnand %p194_p8, %p188_p5 }
  0x18   :  { %49 = vadd.xlane.f32.xlu0 %v48_v8 }
  0x8d   :  { %v55_v10 = vpop.permute.xlu1 %54 }
  0x8e   :  { %vm56_vm1 = vcmp.lt.s32.totalorder %v52_v11, %v55_v10 }
  0x8f   :  { %v153_v16 = vsel %vm56_vm1, 1.0, %v237_v15 }
  0x90   :  { %vm59_vm3 = vcmp.eq.f32.partialorder %v153_v16, 0.0 }
  0x9d   :  { %v47_v13 = vpop.xlane.xlu0 %46 }
  0x9e   :  { %v65_v18 = vrot.slane %v47_v13, %v64_v14 }
  0xa1   :  { %v50_v17 = vpop.xlane.xlu0 %49 }
  0xa2   :  { %v69_v19 = vrot.slane %v50_v17, %v64_v14 }
  0xa4   :  { %v71_v20 = vsel %vm70_vm2, %v69_v19, %v65_v18 }
  0xa5   :  { %v73_v21 = vsel %vm59_vm3, -1e+10, %v71_v20 }
  0xa6   :  { %v75_v22 = vsel %vm74_vm4, %v73_v21, -inf }
  0xa7   :  { %76 = vmax.xlane.f32.xlu1 %v75_v22 }
 0x130   :  { %v77_v23 = vpop.xlane.xlu1 %76 }
 0x131   :  { %v78_v24 = vsub.f32 %v73_v21, %v77_v23 }
 0x133   :  { %v79_v25 = vmul.f32 1.442695, %v78_v24 }
 0x135   :  { %163 = vpow2.f32 %v79_v25 }
 0x142   :  { %v164_v26 = vpop.eup %163 }
 0x143   :  { %v81_v27 = vsel %vm74_vm4, %v164_v26, 0.0 }
 0x144   :  { %82 = vadd.xlane.f32.xlu0 %v81_v27 }
 0x1cd   :  { %v83_v28 = vpop.xlane.xlu0 %82 }
 0x1ce   :  { %165 = vrcp.f32 %v83_v28 }
 0x1db   :  { %v166_v30 = vpop.eup %165 }
 0x1dc   :  { %v85_v31 = vmul.f32 %v166_v30, %v164_v26 }
 0x1de   :  { %v89_v32 = vrot.slane %v85_v31, %v88_v29  ;;  %122 = vst.msk [vmem:[#allocation6] sm:$0x3] %vm74_vm4, %v85_v31  ;;  %v96_v34 = vrot.slane %v85_v31, %v95_v33 }
 0x1e0   :  { %91 = vbcast.lane.b32.xlu0 %v89_v32, 256 }
 0x1e4   :  { %98 = vbcast.lane.b32.xlu0 %v96_v34, 256 }
 0x1e5   :  { %198 = shalt.err (!%p195_p9)
}
 0x1e6   :  { %142 = dma.vmem_to_hbm [thread:$0]  %s140_s1, 32, %s293_s4, [#allocation7]   ;;  %vm120_vm5 = vcmask 254976  }
 0x1e7   :  { %s239_s28 = smov [#allocation5]  }
 0x1e8   :  { %s129_s4 = sshll.u32 %s239_s28, 4  ;;  %s130_s4 = int_to_ptr.vmem [resolvable:$true] %s129_s4 }
 0x1e9   :  { %s207_s29 = scalar_lea.vmem %s130_s4, 32  ;;  %p212_p11 = scmp.lt.s32.totalorder %s130_s4, %s130_s4 }
 0x1ea   :  { %p208_p10 = scmp.ne.s32.totalorder %s130_s4, %s207_s29  ;;  %p213_p12 = scmp.lt.s32.totalorder %s207_s29, %s207_s29 }
 0x1ec   :  { %p214_p13 = por %p213_p12, %p212_p11 }
 0x1ee   :  { %p215_p0 = pnand %p214_p13, %p208_p10 }
 0x252   :  { %v92_v35 = vpop.permute.xlu0 %91 }
 0x253   :  { %v100_v36 = vmul.f32 %v92_v35, %v32_v1 }
 0x255   :  { %v102_v37 = vsel %vm44_vm0, %v100_v36, 0.0 }
 0x256   :  { %v103_v38 = vrot.slane %v102_v37, 4  ;;  %v99_v39 = vpop.permute.xlu0 %98 }
 0x257   :  { %v101_v40 = vmul.f32 %v99_v39, %v33_v3 }
 0x258   :  { %v104_v41 = vadd.f32 %v103_v38, %v102_v37 }
 0x259   :  { %v109_v42 = vsel %vm44_vm0, %v101_v40, 0.0 }
 0x25a   :  { %v105_v43 = vrot.slane %v104_v41, 2  ;;  %v110_v44 = vrot.slane %v109_v42, 4 }
 0x25c   :  { %v106_v45 = vadd.f32 %v105_v43, %v104_v41  ;;  %v111_v46 = vadd.f32 %v110_v44, %v109_v42 }
 0x25e   :  { %v112_v47 = vrot.slane %v111_v46, 2  ;;  %v107_v48 = vrot.slane %v106_v45, 1 }
 0x260   :  { %v113_v49 = vadd.f32 %v112_v47, %v111_v46  ;;  %v108_v51 = vadd.f32 %v107_v48, %v106_v45 }
 0x262   :  { %v114_v50 = vrot.slane %v113_v49, 1 }
 0x264   :  { %v115_v52 = vadd.f32 %v114_v50, %v113_v49 }
 0x266   :  { %v118_v53 = vsel %vm70_vm2, %v115_v52, %v108_v51 }
 0x267   :  { %121 = vst.msk [vmem:[#allocation5] sm:$0x3] %vm120_vm5, %v118_v53 }
 0x268   :  { %218 = shalt.err (!%p215_p0)
}
 0x269   :  { %132 = dma.vmem_to_hbm [thread:$0]  %s130_s4, 32, %s292_s3, [#allocation4]  }
 0x26a   :  { %229 = dma.done.wait [#allocation4], 32  }
 0x26b   :  { %230 = vsyncadd [#allocation4], 4294967264 }
 0x26c   :  { %231 = dma.done.wait [#allocation7], 32  }
 0x26d   :  { %232 = vsyncadd [#allocation7], 4294967264 }
 0x26e   :  { %149 = vsyncpa [#allocation3], 1 }
 0x26f   :  { %150 = vsyncpa [#allocation4], 1 }
 0x270   :  { %151 = vsyncpa [#allocation7], 1 }

</bundles_post_ra>
